<compile_context>
chip_gen: v7x
topology: tpu7x:2x2x1
jax: 0.10.0
libtpu: 0.0.40
codegen_flags: <defaults>
</compile_context>

<pallas_src>
import jax
import jax.numpy as jnp
from jax import lax
from jax.experimental import pallas as pl
from jax.experimental.pallas import tpu as pltpu


# ----------------------------------------------------------------------------
# helpers
# ----------------------------------------------------------------------------
def _round_up(x, m):
    return (x + m - 1) // m * m


def _pad2(a, rows, cols):
    pr, pc = rows - a.shape[0], cols - a.shape[1]
    if pr or pc:
        a = jnp.pad(a, ((0, pr), (0, pc)))
    return a


def _gelu_exact(x):
    # nn.GELU() default in PyTorch is the exact (erf-based) GELU.
    return 0.5 * x * (1.0 + lax.erf(x * 0.7071067811865476))


def _vmem_limit_bytes(default=32 * 1024 * 1024):
    """Half of physical VMEM (64 MiB on v5e/v6e, 32 MiB on v7x)."""
    try:
        cap = getattr(pltpu.get_tpu_info(), "vmem_capacity_bytes", None)
        if cap:
            return int(cap) // 2
    except Exception:
        pass
    return default


def _mlp_normalize(x, w1, b1, w2, b2, w3, b3):
    """MLP (3 linears, exact GELU) + F.normalize(dim=-1). Returns bf16."""
    h = jnp.dot(x, w1, preferred_element_type=jnp.float32) + b1
    h = _gelu_exact(h).astype(jnp.bfloat16)
    h = jnp.dot(h, w2, preferred_element_type=jnp.float32) + b2
    h = _gelu_exact(h).astype(jnp.bfloat16)
    z = jnp.dot(h, w3, preferred_element_type=jnp.float32) + b3
    # F.normalize(z, p=2, dim=-1): z / max(||z||, 1e-12)
    inv = lax.rsqrt(jnp.maximum(jnp.sum(z * z, axis=-1, keepdims=True),
                                jnp.float32(1e-24)))
    return (z * inv).astype(jnp.bfloat16)


# ----------------------------------------------------------------------------
# kernels
# ----------------------------------------------------------------------------
def fused_head_kernel(x_ref, w1_ref, b1_ref, w2_ref, b2_ref, w3_ref, b3_ref,
                      w_eff_ref, o_ref):
    """Small-out_dim path: whole head for one row tile, grid=(row_tiles,)."""
    z = _mlp_normalize(x_ref[...], w1_ref[...], b1_ref[...], w2_ref[...],
                       b2_ref[...], w3_ref[...], b3_ref[...])
    o_ref[...] = jnp.dot(z, w_eff_ref[...],
                         preferred_element_type=jnp.float32).astype(o_ref.dtype)


def mlp_norm_kernel(x_ref, w1_ref, b1_ref, w2_ref, b2_ref, w3_ref, b3_ref,
                    z_ref):
    """Pass 1 of the large-out_dim path: z = normalize(MLP(x)) per row tile."""
    z_ref[...] = _mlp_normalize(x_ref[...], w1_ref[...], b1_ref[...],
                                w2_ref[...], b2_ref[...], w3_ref[...],
                                b3_ref[...])


def proj_kernel(z_ref, w_ref, o_ref):
    """Pass 2: weight-normalized projection tile (z @ w_eff)."""
    o_ref[...] = jnp.dot(z_ref[...], w_ref[...],
                         preferred_element_type=jnp.float32).astype(o_ref.dtype)


# ----------------------------------------------------------------------------
# one-time parameter preparation (cache the result!)
# ----------------------------------------------------------------------------
def prepare_head_params(params, *, tn=512, small_out_threshold=1024,
                        two_pass=None):
    """Pad/cast weights once, fold the weight-norm column scale into w_eff."""
    in_dim, hid = params["w1"].shape
    bneck, out_dim = params["v_last"].shape

    in_p = _round_up(in_dim, 128)
    hid_p = _round_up(hid, 128)
    bn_p = _round_up(bneck, 128)
    out_p = _round_up(out_dim, 128)

    if two_pass is None:
        two_pass = out_p > small_out_threshold
    if two_pass:
        tn = max(128, min(_round_up(tn, 128), out_p))
        if tn >= 256:                      # keep the 256-wide MXU filled
            tn = tn // 256 * 256
        out_p = _round_up(out_p, tn)
    else:
        tn = out_p                         # single out tile, no inner axis

    # weight_norm: w_eff = g * v / ||v||_col (g == 1 after init). Folded here
    # so the kernel never sees a separate scale. NOTE: like torch weight_norm
    # there is no eps clamp (an all-zero column would give inf).
    v = params["v_last"].astype(jnp.float32)
    scale = params["g_last"].astype(jnp.float32) / jnp.linalg.norm(
        v, axis=0, keepdims=True)
    w_eff = v * scale

    prep = {
        "w1": _pad2(params["w1"], in_p, hid_p).astype(jnp.bfloat16),
        "b1": _pad2(params["b1"], 1, hid_p).astype(jnp.float32),
        "w2": _pad2(params["w2"], hid_p, hid_p).astype(jnp.bfloat16),
        "b2": _pad2(params["b2"], 1, hid_p).astype(jnp.float32),
        "w3": _pad2(params["w3"], hid_p, bn_p).astype(jnp.bfloat16),
        "b3": _pad2(params["b3"], 1, bn_p).astype(jnp.float32),
        "w_eff": _pad2(w_eff, bn_p, out_p).astype(jnp.bfloat16),
    }
    meta = dict(in_dim=in_dim, out_dim=out_dim, in_p=in_p, hid_p=hid_p,
                bn_p=bn_p, out_p=out_p, tn=int(tn), two_pass=bool(two_pass))
    return prep, meta


# ----------------------------------------------------------------------------
# forward
# ----------------------------------------------------------------------------
def head_forward(x, prep, meta, *, tm=512, out_dtype=jnp.float32):
    """x: (N, in_dim) float32. prep/meta: from prepare_head_params (cached)."""
    n, in_dim = x.shape
    assert in_dim == meta["in_dim"]
    in_p, hid_p, bn_p = meta["in_p"], meta["hid_p"], meta["bn_p"]
    out_p, tn, out_dim = meta["out_p"], meta["tn"], meta["out_dim"]

    # row tile: big (cuts re-streaming of w_eff), multiple of 16 (bf16 packing)
    tm = _round_up(max(16, min(tm, _round_up(n, 16))), 16)
    n_p = _round_up(n, tm)
    row_tiles = n_p // tm

    x_p = _pad2(x, n_p, in_p).astype(jnp.bfloat16)
    vmem_limit = _vmem_limit_bytes()

    # Resident (constant block index) params: single-buffered — no VMEM waste.
    def resident(shape):
        return pl.BlockSpec(shape, lambda i: (0, 0),
                            pipeline_mode=pl.Buffered(1))

    mlp_specs = [
        pl.BlockSpec((tm, in_p), lambda i: (i, 0)),     # x row tile (streamed)
        resident((in_p, hid_p)), resident((1, hid_p)),  # w1, b1
        resident((hid_p, hid_p)), resident((1, hid_p)), # w2, b2
        resident((hid_p, bn_p)), resident((1, bn_p)),   # w3, b3
    ]

    if not meta["two_pass"]:
        # ---- small out_dim: one fused kernel, grid over row tiles only ------
        out = pl.pallas_call(
            fused_head_kernel,
            out_shape=jax.ShapeDtypeStruct((n_p, out_p), out_dtype),
            grid=(row_tiles,),
            in_specs=mlp_specs + [resident((bn_p, out_p))],   # w_eff resident
            out_specs=pl.BlockSpec((tm, out_p), lambda i: (i, 0)),
            compiler_params=pltpu.CompilerParams(
                dimension_semantics=("parallel",),
                vmem_limit_bytes=vmem_limit),
        )(x_p, prep["w1"], prep["b1"], prep["w2"], prep["b2"],
          prep["w3"], prep["b3"], prep["w_eff"])
        return out[:n, :out_dim]

    # ---- large out_dim: two-pass, both projection grid axes parallel --------
    z = pl.pallas_call(
        mlp_norm_kernel,
        out_shape=jax.ShapeDtypeStruct((n_p, bn_p), jnp.bfloat16),
        grid=(row_tiles,),
        in_specs=mlp_specs,
        out_specs=pl.BlockSpec((tm, bn_p), lambda i: (i, 0)),
        compiler_params=pltpu.CompilerParams(
            dimension_semantics=("parallel",),
            vmem_limit_bytes=vmem_limit),
    )(x_p, prep["w1"], prep["b1"], prep["w2"], prep["b2"],
      prep["w3"], prep["b3"])

    n_out_tiles = out_p // tn
    v_buffers = min(3, max(2, n_out_tiles))   # deeper prefetch of the big weight
    out = pl.pallas_call(
        proj_kernel,
        out_shape=jax.ShapeDtypeStruct((n_p, out_p), out_dtype),
        grid=(row_tiles, n_out_tiles),
        in_specs=[
            pl.BlockSpec((tm, bn_p), lambda i, j: (i, 0)),
            pl.BlockSpec((bn_p, tn), lambda i, j: (0, j),
                         pipeline_mode=pl.Buffered(v_buffers)),
        ],
        out_specs=pl.BlockSpec((tm, tn), lambda i, j: (i, j)),
        compiler_params=pltpu.CompilerParams(
            # both axes independent -> shards across TensorCores on v7x even
            # when row_tiles == 1 (no z-scratch carry anymore)
            dimension_semantics=("parallel", "parallel"),
            vmem_limit_bytes=vmem_limit),
    )(z, prep["w_eff"])
    return out[:n, :out_dim]


# ----------------------------------------------------------------------------
# synthetic params + pure-JAX reference
# ----------------------------------------------------------------------------
def init_head_params(key, in_dim, out_dim, hidden_dim, bottleneck_dim):
    """Mirrors Head.__init__ (n_layers=3): weight ~ N(0, 0.02), bias = 0,
    weight_g = 1. Weights stored transposed: (in_features, out_features)."""
    k1, k2, k3, k4 = jax.random.split(key, 4)
    std = 0.02
    return {
        "w1": std * jax.random.normal(k1, (in_dim, hidden_dim), jnp.float32),
        "b1": jnp.zeros((1, hidden_dim), jnp.float32),
        "w2": std * jax.random.normal(k2, (hidden_dim, hidden_dim), jnp.float32),
        "b2": jnp.zeros((1, hidden_dim), jnp.float32),
        "w3": std * jax.random.normal(k3, (hidden_dim, bottleneck_dim), jnp.float32),
        "b3": jnp.zeros((1, bottleneck_dim), jnp.float32),
        "v_last": std * jax.random.normal(k4, (bottleneck_dim, out_dim), jnp.float32),
        "g_last": jnp.ones((1, out_dim), jnp.float32),  # weight_g.data.fill_(1)
    }


def head_reference(x, p):
    """Plain-JAX f32 reference mirroring the PyTorch forward."""
    h = jax.nn.gelu(x @ p["w1"] + p["b1"], approximate=False)
    h = jax.nn.gelu(h @ p["w2"] + p["b2"], approximate=False)
    z = h @ p["w3"] + p["b3"]
    z = z / jnp.maximum(jnp.linalg.norm(z, axis=-1, keepdims=True), 1e-12)
    v = p["v_last"]
    w_eff = p["g_last"] * v / jnp.linalg.norm(v, axis=0, keepdims=True)
    return z @ w_eff


if __name__ == "__main__":
    key = jax.random.PRNGKey(0)
    kx, kp = jax.random.split(key)

    # Small but tiling-exercising shapes (module defaults: hidden=bneck=256).
    N, IN_DIM, OUT_DIM = 48, 64, 300
    HIDDEN_DIM, BOTTLENECK_DIM = 256, 256

    x = jax.random.normal(kx, (N, IN_DIM), jnp.float32)
    params = init_head_params(kp, IN_DIM, OUT_DIM, HIDDEN_DIM, BOTTLENECK_DIM)
    ref = head_reference(x, params)

    # Path 1: small out_dim -> single fused kernel (grid = (3,) row tiles).
    prep1, meta1 = prepare_head_params(params)
    out1 = jax.block_until_ready(head_forward(x, prep1, meta1, tm=16))
    assert out1.shape == (N, OUT_DIM)
    assert jnp.allclose(out1, ref, atol=2e-2, rtol=2e-2), "fused path mismatch"

    # Path 2: forced two-pass (MLP+normalize kernel, then z @ w_eff projection
    # with grid (3, 3), both axes parallel), bf16 output to exercise the
    # reduced-writeback path.
    prep2, meta2 = prepare_head_params(params, tn=128, two_pass=True)
    out2 = jax.block_until_ready(
        head_forward(x, prep2, meta2, tm=16, out_dtype=jnp.bfloat16))
    assert out2.shape == (N, OUT_DIM)
    assert jnp.allclose(out2.astype(jnp.float32), ref, atol=3e-2, rtol=3e-2), \
        "two-pass path mismatch"

    print("KERNEL_OK")
</pallas_src>

<mosaic_0001>
module attributes {stable_mosaic.version = 11 : i64} {
  func.func @fused_head_kernel(%arg0: i32, %arg1: memref<16x128xbf16, #tpu.memory_space<vmem>>, %arg2: memref<128x256xbf16, #tpu.memory_space<vmem>>, %arg3: memref<1x256xf32, #tpu.memory_space<vmem>>, %arg4: memref<256x256xbf16, #tpu.memory_space<vmem>>, %arg5: memref<1x256xf32, #tpu.memory_space<vmem>>, %arg6: memref<256x256xbf16, #tpu.memory_space<vmem>>, %arg7: memref<1x256xf32, #tpu.memory_space<vmem>>, %arg8: memref<256x384xbf16, #tpu.memory_space<vmem>>, %arg9: memref<16x384xf32, #tpu.memory_space<vmem>>) attributes {dimension_semantics = [#tpu.dimension_semantics<parallel>], iteration_bounds = array<i64: 3>, scalar_prefetch = 0 : i64, scratch_operands = 0 : i64, tpu.core_type = #tpu.core_type<tc>, window_params = [{transform_indices = @transform_0, window_bounds = array<i64: 16, 128>}, {pipeline_mode = #tpu.pipeline_mode<synchronous>, transform_indices = @transform_1, window_bounds = array<i64: 128, 256>}, {pipeline_mode = #tpu.pipeline_mode<synchronous>, transform_indices = @transform_2, window_bounds = array<i64: 1, 256>}, {pipeline_mode = #tpu.pipeline_mode<synchronous>, transform_indices = @transform_3, window_bounds = array<i64: 256, 256>}, {pipeline_mode = #tpu.pipeline_mode<synchronous>, transform_indices = @transform_4, window_bounds = array<i64: 1, 256>}, {pipeline_mode = #tpu.pipeline_mode<synchronous>, transform_indices = @transform_5, window_bounds = array<i64: 256, 256>}, {pipeline_mode = #tpu.pipeline_mode<synchronous>, transform_indices = @transform_6, window_bounds = array<i64: 1, 256>}, {pipeline_mode = #tpu.pipeline_mode<synchronous>, transform_indices = @transform_7, window_bounds = array<i64: 256, 384>}, {transform_indices = @transform_8, window_bounds = array<i64: 16, 384>}]} {
    %c0 = arith.constant 0 : index
    %c0_0 = arith.constant 0 : index
    %0 = vector.load %arg1[%c0, %c0_0] : memref<16x128xbf16, #tpu.memory_space<vmem>>, vector<16x128xbf16>
    %c0_1 = arith.constant 0 : index
    %c0_2 = arith.constant 0 : index
    %1 = vector.load %arg2[%c0_1, %c0_2] : memref<128x256xbf16, #tpu.memory_space<vmem>>, vector<128x256xbf16>
    %c0_3 = arith.constant 0 : index
    %c0_4 = arith.constant 0 : index
    %2 = vector.load %arg3[%c0_3, %c0_4] : memref<1x256xf32, #tpu.memory_space<vmem>>, vector<1x256xf32>
    %c0_5 = arith.constant 0 : index
    %c0_6 = arith.constant 0 : index
    %3 = vector.load %arg4[%c0_5, %c0_6] : memref<256x256xbf16, #tpu.memory_space<vmem>>, vector<256x256xbf16>
    %c0_7 = arith.constant 0 : index
    %c0_8 = arith.constant 0 : index
    %4 = vector.load %arg5[%c0_7, %c0_8] : memref<1x256xf32, #tpu.memory_space<vmem>>, vector<1x256xf32>
    %c0_9 = arith.constant 0 : index
    %c0_10 = arith.constant 0 : index
    %5 = vector.load %arg6[%c0_9, %c0_10] : memref<256x256xbf16, #tpu.memory_space<vmem>>, vector<256x256xbf16>
    %c0_11 = arith.constant 0 : index
    %c0_12 = arith.constant 0 : index
    %6 = vector.load %arg7[%c0_11, %c0_12] : memref<1x256xf32, #tpu.memory_space<vmem>>, vector<1x256xf32>
    %cst = arith.constant dense<0.000000e+00> : vector<16x256xf32>
    %7 = tpu.matmul %0, %1, %cst {dimension_numbers = #tpu.dot_dimension_numbers<[1], [0], [0], [1], [0, 0, 1, 1], [], []>} : vector<16x128xbf16>, vector<128x256xbf16>, vector<16x256xf32> -> vector<16x256xf32>
    %8 = vector.broadcast %2 : vector<1x256xf32> to vector<16x256xf32>
    %9 = arith.addf %7, %8 : vector<16x256xf32>
    %cst_13 = arith.constant 5.000000e-01 : f32
    %10 = vector.broadcast %cst_13 : f32 to vector<16x256xf32>
    %11 = arith.mulf %10, %9 : vector<16x256xf32>
    %cst_14 = arith.constant 0.707106769 : f32
    %12 = vector.broadcast %cst_14 : f32 to vector<16x256xf32>
    %13 = arith.mulf %9, %12 : vector<16x256xf32>
    %14 = math.erf %13 : vector<16x256xf32>
    %cst_15 = arith.constant 1.000000e+00 : f32
    %15 = vector.broadcast %cst_15 : f32 to vector<16x256xf32>
    %16 = arith.addf %15, %14 : vector<16x256xf32>
    %17 = arith.mulf %11, %16 : vector<16x256xf32>
    %18 = arith.truncf %17 : vector<16x256xf32> to vector<16x256xbf16>
    %cst_16 = arith.constant dense<0.000000e+00> : vector<16x256xf32>
    %19 = tpu.matmul %18, %3, %cst_16 {dimension_numbers = #tpu.dot_dimension_numbers<[1], [0], [0], [1], [0, 0, 1, 1], [], []>} : vector<16x256xbf16>, vector<256x256xbf16>, vector<16x256xf32> -> vector<16x256xf32>
    %20 = vector.broadcast %4 : vector<1x256xf32> to vector<16x256xf32>
    %21 = arith.addf %19, %20 : vector<16x256xf32>
    %cst_17 = arith.constant 5.000000e-01 : f32
    %22 = vector.broadcast %cst_17 : f32 to vector<16x256xf32>
    %23 = arith.mulf %22, %21 : vector<16x256xf32>
    %cst_18 = arith.constant 0.707106769 : f32
    %24 = vector.broadcast %cst_18 : f32 to vector<16x256xf32>
    %25 = arith.mulf %21, %24 : vector<16x256xf32>
    %26 = math.erf %25 : vector<16x256xf32>
    %cst_19 = arith.constant 1.000000e+00 : f32
    %27 = vector.broadcast %cst_19 : f32 to vector<16x256xf32>
    %28 = arith.addf %27, %26 : vector<16x256xf32>
    %29 = arith.mulf %23, %28 : vector<16x256xf32>
    %30 = arith.truncf %29 : vector<16x256xf32> to vector<16x256xbf16>
    %cst_20 = arith.constant dense<0.000000e+00> : vector<16x256xf32>
    %31 = tpu.matmul %30, %5, %cst_20 {dimension_numbers = #tpu.dot_dimension_numbers<[1], [0], [0], [1], [0, 0, 1, 1], [], []>} : vector<16x256xbf16>, vector<256x256xbf16>, vector<16x256xf32> -> vector<16x256xf32>
    %32 = vector.broadcast %6 : vector<1x256xf32> to vector<16x256xf32>
    %33 = arith.addf %31, %32 : vector<16x256xf32>
    %34 = arith.mulf %33, %33 : vector<16x256xf32>
    %cst_21 = arith.constant dense<0.000000e+00> : vector<16xf32>
    %35 = vector.multi_reduction <add>, %34, %cst_21 [1] : vector<16x256xf32> to vector<16xf32>
    %36 = vector.shape_cast %35 : vector<16xf32> to vector<16x1xf32>
    %cst_22 = arith.constant 1.000000e-24 : f32
    %37 = vector.broadcast %cst_22 : f32 to vector<16x1xf32>
    %38 = arith.maximumf %36, %37 : vector<16x1xf32>
    %39 = math.rsqrt %38 : vector<16x1xf32>
    %40 = vector.broadcast %39 : vector<16x1xf32> to vector<16x256xf32>
    %41 = arith.mulf %33, %40 : vector<16x256xf32>
    %42 = arith.truncf %41 : vector<16x256xf32> to vector<16x256xbf16>
    %c0_23 = arith.constant 0 : index
    %c0_24 = arith.constant 0 : index
    %43 = vector.load %arg8[%c0_23, %c0_24] : memref<256x384xbf16, #tpu.memory_space<vmem>>, vector<256x384xbf16>
    %cst_25 = arith.constant dense<0.000000e+00> : vector<16x384xf32>
    %44 = tpu.matmul %42, %43, %cst_25 {dimension_numbers = #tpu.dot_dimension_numbers<[1], [0], [0], [1], [0, 0, 1, 1], [], []>} : vector<16x256xbf16>, vector<256x384xbf16>, vector<16x384xf32> -> vector<16x384xf32>
    %c0_26 = arith.constant 0 : index
    %c0_27 = arith.constant 0 : index
    %45 = vector.load %arg9[%c0_26, %c0_27] : memref<16x384xf32, #tpu.memory_space<vmem>>, vector<16x384xf32>
    tpu.vector_store %arg9[%c0_26, %c0_27], %44 {strides = array<i32>} : memref<16x384xf32, #tpu.memory_space<vmem>>, vector<16x384xf32>,
    return
  }
  func.func @transform_0(%arg0: i32) -> (i32, i32) {
    %c0_i32 = arith.constant 0 : i32
    %c0_i32_0 = arith.constant 0 : i32
    return %arg0, %c0_i32 : i32, i32
  }
  func.func @transform_1(%arg0: i32) -> (i32, i32) {
    %c0_i32 = arith.constant 0 : i32
    %c0_i32_0 = arith.constant 0 : i32
    %c0_i32_1 = arith.constant 0 : i32
    return %c0_i32, %c0_i32_0 : i32, i32
  }
  func.func @transform_2(%arg0: i32) -> (i32, i32) {
    %c0_i32 = arith.constant 0 : i32
    %c0_i32_0 = arith.constant 0 : i32
    %c0_i32_1 = arith.constant 0 : i32
    return %c0_i32, %c0_i32_0 : i32, i32
  }
  func.func @transform_3(%arg0: i32) -> (i32, i32) {
    %c0_i32 = arith.constant 0 : i32
    %c0_i32_0 = arith.constant 0 : i32
    %c0_i32_1 = arith.constant 0 : i32
    return %c0_i32, %c0_i32_0 : i32, i32
  }
  func.func @transform_4(%arg0: i32) -> (i32, i32) {
    %c0_i32 = arith.constant 0 : i32
    %c0_i32_0 = arith.constant 0 : i32
    %c0_i32_1 = arith.constant 0 : i32
    return %c0_i32, %c0_i32_0 : i32, i32
  }
  func.func @transform_5(%arg0: i32) -> (i32, i32) {
    %c0_i32 = arith.constant 0 : i32
    %c0_i32_0 = arith.constant 0 : i32
    %c0_i32_1 = arith.constant 0 : i32
    return %c0_i32, %c0_i32_0 : i32, i32
  }
  func.func @transform_6(%arg0: i32) -> (i32, i32) {
    %c0_i32 = arith.constant 0 : i32
    %c0_i32_0 = arith.constant 0 : i32
    %c0_i32_1 = arith.constant 0 : i32
    return %c0_i32, %c0_i32_0 : i32, i32
  }
  func.func @transform_7(%arg0: i32) -> (i32, i32) {
    %c0_i32 = arith.constant 0 : i32
    %c0_i32_0 = arith.constant 0 : i32
    %c0_i32_1 = arith.constant 0 : i32
    return %c0_i32, %c0_i32_0 : i32, i32
  }
  func.func @transform_8(%arg0: i32) -> (i32, i32) {
    %c0_i32 = arith.constant 0 : i32
    %c0_i32_0 = arith.constant 0 : i32
    return %arg0, %c0_i32 : i32, i32
  }
}

</mosaic_0001>

<bundles_post_ra>
// kernel: tpu_custom_call.1
= control target key start
LH: loop header
LB: loop body
LE: loop exit
PB: predicated region body
PF: predicated region fallthrough
CT: control target
= control target key end

     0   :  { %13 = vsyncpa [#allocation3], 0  ;;  %s2704_s0 = inlined_call_operand.hbm [shape: bf16[48,128], index: 0, kind: input, shape index: {}]   ;;  %s2705_s1 = inlined_call_operand.hbm [shape: bf16[128,256], index: 1, kind: input, shape index: {}]   ;;  %s2706_s2 = inlined_call_operand.vmem [shape: f32[1,256], index: 2, kind: input, shape index: {}]   ;;  %s2707_s3 = inlined_call_operand.hbm [shape: bf16[256,256], index: 3, kind: input, shape index: {}]   ;;  %s2708_s4 = inlined_call_operand.vmem [shape: f32[1,256], index: 4, kind: input, shape index: {}]   ;;  %s2709_s5 = inlined_call_operand.hbm [shape: bf16[256,256], index: 5, kind: input, shape index: {}]   ;;  %s2710_s6 = inlined_call_operand.vmem [shape: f32[1,256], index: 6, kind: input, shape index: {}]   ;;  %s2711_s7 = inlined_call_operand.hbm [shape: bf16[256,384], index: 7, kind: input, shape index: {}]   ;;  %s2712_s8 = inlined_call_operand.hbm [shape: f32[48,384], index: 8, kind: output, shape index: {}]  }
   0x1   :  { %15 = vsyncpa [#allocation3 + $0x1], 0 }
   0x2   :  { %16 = vsyncpa [#allocation6], 0 }
   0x3   :  { %17 = vsyncpa [#allocation9], 0 }
   0x4   :  { %18 = vsyncpa [#allocation4], 0 }
   0x5   :  { %20 = vsyncpa [#allocation4 + $0x1], 0  ;;  %s2392_s27 = smov 0   ;;  %s2394_s28 = smov 0  }
   0x6   :  { %s2396_s29 = smov 0   ;;  %s2398_s30 = smov 0  }
   0x7 LB: > { %2718 = sst [smem:[#allocation16_spill]] %s2318_s27  ;;  %s2413_s9 = sadd.s32 4294967295, %s2330_s30   ;;  %s2330_s30 = sphi %s2398_s30, %s2741_s30   ;;  %s2326_s29 = sphi %s2396_s29, %s2740_s29   ;;  %s2322_s28 = sphi %s2394_s28, %s2739_s28   ;;  %s2318_s27 = sphi %s2392_s27, %s2738_s27  }
   0x8   : > { %s1638_s10 = sadd.s32 4294967294, %s2330_s30   ;;  %p46_p0 = scmp.ne.s32.totalorder %s2322_s28, %s2318_s27 }
   0x9   : > { %p2713_p1 = scmp.eq.s32.totalorder %s2413_s9, 0  ;;  %p223_p3 = scmp.eq.s32.totalorder %s1638_s10, 2 }
   0xa   : > { %p1639_p5 = scmp.ge.s32.totalorder %s2330_s30, 1  ;;  %p230_p7 = scmp.lt.s32.totalorder %s2330_s30, 4 }
   0xb   : > { %p2422_p4 = por %p2713_p1, %p46_p0  ;;  %p2427_p6 = por %p223_p3, %p46_p0 }
   0xc   : > { %p2432_p8 = pnand %p1639_p5, %p230_p7  ;;  %s2332_s14 = smov [#allocation5]  }
   0xd   : > { %s2719_s11 = scalar_select %p2422_p4, 1, 0 }
   0xe   : > { %s2720_s12 = scalar_select %p2427_p6, 1, 0 }
   0xf   : > { %s2722_s13 = scalar_select %p2432_p8, 1, 0 }
  0x10   : > { %2721 = sst [smem:[#allocation17_spill]] %s2720_s12  ;;  %s242_s15 = sshll.u32 %s2332_s14, 4  ;;  %s2436_s15 = int_to_ptr.vmem [resolvable:$true] %s242_s15 }
  0x11   : > { %p1833_p9 = pneg %p2432_p8  ;;  %s2333_s17 = smov [#allocation8]  }
  0x12   : > { %s274_s18 = sshll.u32 %s2333_s17, 4  ;;  %s2334_s19 = smov [#allocation7]   ;;  %s2446_s18 = int_to_ptr.vmem [resolvable:$true] %s274_s18 }
  0x13   : > { %p2442_p10 = pnand %p1833_p9, %p2713_p1  ;;  %s2448_s20 = sshll.u32 %s2334_s19, 4  ;;  %s259_s20 = int_to_ptr.vmem [resolvable:$true] %s2448_s20 }
  0x14   : > { %s2114_s23 = scalar_lea.hbm %s2705_s1, 2048 }
  0x15   : > { %p2115_p11 = scmp.ne.s32.totalorder %s2705_s1, %s2114_s23  ;;  %p2458_p12 = pneg %p2442_p10 }
  0x16   : > { %p2121_p3 = scmp.lt.u32.totalorder %s2114_s23, %s2705_s1 }
  0x17   : > { %p2117_p13 = pnand %p2458_p12, %p2115_p11 }
  0x19   : > { %p2118_p0 = pneg %p2117_p13 }
  0x1b   : > { %p2123_p5 = pnand %p2121_p3, %p2118_p0 }
  0x1d   : > { %2126 = shalt.err (!%p2123_p5)
}
  0x1e   : > { %s2127_s17 = scalar_lea.vmem %s2436_s15, 2048  ;;  %p2135_p2 = scmp.lt.s32.totalorder %s2436_s15, %s2436_s15 }
  0x1f   : > { %p2128_p7 = scmp.ne.s32.totalorder %s2436_s15, %s2127_s17  ;;  %p2136_p6 = scmp.lt.s32.totalorder %s2127_s17, %s2127_s17 }
  0x21   : > { %p2130_p9 = pnand %p2128_p7, %p2458_p12  ;;  %p2137_p11 = por %p2136_p6, %p2135_p2 }
  0x23   : > { %p2131_p1 = pneg %p2130_p9 }
  0x25   : > { %p2138_p13 = pnand %p2137_p11, %p2131_p1 }
  0x27   : > { %2141 = shalt.err (!%p2138_p13)
}
  0x28   : > { %s2335_s19 = smov 128   ;;  %s2336_s21 = smov 8  }
  0x29   : > { %1836 = dma.hbm_to_vmem [thread:$0]  (!%p2442_p10), %s2705_s1, 2048, %s2436_s15, [#allocation6], %s2335_s19, %s2335_s19, %s2336_s21  }
  0x2a   : > { %s2142_s10 = scalar_lea.hbm %s2709_s5, 4096 }
  0x2b   : > { %p2143_p1 = scmp.ne.s32.totalorder %s2709_s5, %s2142_s10  ;;  %p2149_p0 = scmp.lt.u32.totalorder %s2142_s10, %s2709_s5 }
  0x2d   : > { %p2145_p2 = pnand %p2143_p1, %p2458_p12 }
  0x2f   : > { %p2146_p6 = pneg %p2145_p2 }
  0x31   : > { %p2151_p3 = pnand %p2149_p0, %p2146_p6 }
  0x33   : > { %2154 = shalt.err (!%p2151_p3)
}
  0x34   : > { %s2155_s15 = scalar_lea.vmem %s2446_s18, 4096  ;;  %p2163_p11 = scmp.lt.s32.totalorder %s2446_s18, %s2446_s18 }
  0x35   : > { %p2156_p5 = scmp.ne.s32.totalorder %s2446_s18, %s2155_s15  ;;  %p2164_p13 = scmp.lt.s32.totalorder %s2155_s15, %s2155_s15 }
  0x37   : > { %p2158_p7 = pnand %p2156_p5, %p2458_p12  ;;  %p2165_p1 = por %p2164_p13, %p2163_p11 }
  0x39   : > { %p2159_p9 = pneg %p2158_p7 }
  0x3b   : > { %p2166_p2 = pnand %p2165_p1, %p2159_p9 }
  0x3d   : > { %2169 = shalt.err (!%p2166_p2)
}
  0x3e   : > { %1842 = dma.hbm_to_vmem [thread:$0]  (!%p2442_p10), %s2709_s5, 4096, %s2446_s18, [#allocation9], %s2335_s19, %s2335_s19, %s2336_s21  }
  0x3f   : > { %s2170_s24 = scalar_lea.hbm %s2707_s3, 4096 }
  0x40   : > { %p2171_p6 = scmp.ne.s32.totalorder %s2707_s3, %s2170_s24  ;;  %p2177_p5 = scmp.lt.u32.totalorder %s2170_s24, %s2707_s3 }
  0x42   : > { %p2173_p0 = pnand %p2171_p6, %p2458_p12 }
  0x44   : > { %p2174_p3 = pneg %p2173_p0 }
  0x46   : > { %p2179_p7 = pnand %p2177_p5, %p2174_p3 }
  0x48   : > { %2182 = shalt.err (!%p2179_p7)
}
  0x49   : > { %s2183_s15 = scalar_lea.vmem %s259_s20, 4096  ;;  %p2191_p1 = scmp.lt.s32.totalorder %s259_s20, %s259_s20 }
  0x4a   : > { %p2184_p9 = scmp.ne.s32.totalorder %s259_s20, %s2183_s15  ;;  %p2192_p2 = scmp.lt.s32.totalorder %s2183_s15, %s2183_s15 }
  0x4c   : > { %p2186_p11 = pnand %p2184_p9, %p2458_p12  ;;  %p2193_p4 = por %p2192_p2, %p2191_p1 }
  0x4e   : > { %p2187_p13 = pneg %p2186_p11 }
  0x50   : > { %p2194_p8 = pnand %p2193_p4, %p2187_p13 }
  0x52   : > { %2197 = shalt.err (!%p2194_p8)
}
  0x53   : > { %1839 = dma.hbm_to_vmem [thread:$0]  (!%p2442_p10), %s2707_s3, 4096, %s259_s20, [#allocation6], %s2335_s19, %s2335_s19, %s2336_s21  }
  0x54   : > { %s2337_s12 = smov [#allocation10]   ;;  %s2198_s25 = scalar_lea.hbm %s2711_s7, 6144 }
  0x55   : > { %s290_s22 = sshll.u32 %s2337_s12, 4  ;;  %p2199_p4 = scmp.ne.s32.totalorder %s2711_s7, %s2198_s25  ;;  %s291_s22 = int_to_ptr.vmem [resolvable:$true] %s290_s22 }
  0x56   : > { %p2205_p0 = scmp.lt.u32.totalorder %s2198_s25, %s2711_s7 }
  0x57   : > { %p2201_p8 = pnand %p2199_p4, %p2458_p12 }
  0x59   : > { %p2202_p6 = pneg %p2201_p8 }
  0x5b   : > { %p2207_p3 = pnand %p2205_p0, %p2202_p6 }
  0x5d   : > { %2210 = shalt.err (!%p2207_p3)
}
  0x5e   : > { %s2211_s20 = scalar_lea.vmem %s291_s22, 6144  ;;  %p2219_p11 = scmp.lt.s32.totalorder %s291_s22, %s291_s22 }
  0x5f   : > { %p2212_p5 = scmp.ne.s32.totalorder %s291_s22, %s2211_s20  ;;  %p2220_p13 = scmp.lt.s32.totalorder %s2211_s20, %s2211_s20 }
  0x61   : > { %p2214_p7 = pnand %p2212_p5, %p2458_p12  ;;  %p2221_p1 = por %p2220_p13, %p2219_p11 }
  0x63   : > { %p2215_p9 = pneg %p2214_p7 }
  0x65   : > { %p2222_p2 = pnand %p2221_p1, %p2215_p9 }
  0x67   : > { %2225 = shalt.err (!%p2222_p2)
}
  0x68   : > { %s2338_s19 = smov 192   ;;  %s2339_s26 = smov 12  }
  0x69   : > { %1845 = dma.hbm_to_vmem [thread:$0]  (!%p2442_p10), %s2711_s7, 6144, %s291_s22, [#allocation9], %s2338_s19, %s2338_s19, %s2339_s26  }
  0x6a   : > { %s2549_s27 = sadd.s32 1, %s2330_s30   ;;  %s33_s23 = sadd.s32 1, %s2326_s29 }
  0x6b   : > { %s30_s12 = ssub.s32 %s2330_s30, %s2549_s27  ;;  %p40_p4 = scmp.ne.s32.totalorder %s2326_s29, %s2322_s28 }
  0x6c   : > { %p31_p12 = scmp.eq.s32.totalorder %s30_s12, 0  ;;  %p41_p8 = scmp.eq.s32.totalorder %s2330_s30, 0 }
  0x6d   : > { %p2725_p0 = scmp.eq.s32.totalorder %s2413_s9, 2  ;;  %p1858_p5 = scmp.lt.s32.totalorder %s2330_s30, 3 }
  0x6e   : > { %s2558_s24 = scalar_select %p31_p12, %s2326_s29, %s33_s23  }
  0x6f   : > { %p42_p6 = por %p41_p8, %p40_p4  ;;  %p2562_p3 = por %p2725_p0, %p40_p4 }
  0x70   : > { %s304_s16 = sand.u32 1, %s2326_s29   ;;  %s1788_s22 = sshll.u32 %s2330_s30, 7 }
  0x71   : > { %s1645_s10 = sshll.u32 %s304_s16, 3  ;;  %s2572_s15 = scalar_lea.hbm %s2704_s0, %s1788_s22 }
  0x72   : > { %s308_s20 = scalar_lea.vmem [#allocation2], %s1645_s10  ;;  %p2576_p10 = pnand %p1858_p5, %p42_p6 }
  0x73   : > { %s315_s19 = sshll.u32 %s308_s20, 4  ;;  %s2580_s21 = scalar_lea.sflag [#allocation3], %s304_s16  ;;  %s2574_s19 = int_to_ptr.vmem [resolvable:$true] %s315_s19 }
  0x74   : > { %s2226_s18 = scalar_lea.hbm %s2572_s15, 128  ;;  %p2228_p9 = pneg %p2576_p10 }
  0x75   : > { %p2227_p7 = scmp.ne.s32.totalorder %s2572_s15, %s2226_s18  ;;  %s2231_s10 = scalar_lea.hbm %s2704_s0, 384 }
  0x76   : > { %p2232_p1 = scmp.lt.u32.totalorder %s2572_s15, %s2704_s0  ;;  %p2233_p2 = scmp.lt.u32.totalorder %s2231_s10, %s2226_s18 }
  0x77   : > { %p2229_p11 = pnand %p2228_p9, %p2227_p7  ;;  %p2235_p4 = scmp.lt.u32.totalorder %s2226_s18, %s2572_s15 }
  0x78   : > { %p2234_p12 = por %p2233_p2, %p2232_p1 }
  0x79   : > { %p2230_p13 = pneg %p2229_p11 }
  0x7a   : > { %p2236_p8 = por %p2235_p4, %p2234_p12 }
  0x7c   : > { %p2237_p6 = pnand %p2236_p8, %p2230_p13 }
  0x7e   : > { %2240 = shalt.err (!%p2237_p6)
}
  0x7f   : > { %s2241_s16 = scalar_lea.vmem %s2574_s19, 128  ;;  %s2340_s17 = smov [#allocation2]  }
  0x80   : > { %p2242_p0 = scmp.ne.s32.totalorder %s2574_s19, %s2241_s16  ;;  %s2246_s20 = sshll.u32 %s2340_s17, 4  ;;  %s2247_s20 = int_to_ptr.vmem [resolvable:$false] %s2246_s20 }
  0x81   : > { %s2248_s12 = scalar_lea.vmem %s2247_s20, 256  ;;  %p2249_p11 = scmp.lt.s32.totalorder %s2574_s19, %s2247_s20 }
  0x82   : > { %p2244_p5 = pnand %p2242_p0, %p2228_p9  ;;  %p2250_p1 = scmp.lt.s32.totalorder %s2248_s12, %s2241_s16 }
  0x84   : > { %p2245_p7 = pneg %p2244_p5  ;;  %p2251_p2 = por %p2250_p1, %p2249_p11 }
  0x86   : > { %p2252_p12 = pnand %p2251_p2, %p2245_p7 }
  0x88   : > { %2255 = shalt.err (!%p2252_p12)
}
  0x89   : > { %s2341_s18 = smov 64   ;;  %s2342_s23 = smov 4  }
  0x8a   : > { %1849 = dma.hbm_to_vmem [thread:$0]  (!%p2576_p10), %s2572_s15, 128, %s2574_s19, %s2580_s21, %s2341_s18, %s2341_s18, %s2342_s23  }
  0x8b   : > { %p2728_p9 = scmp.ne.s32.totalorder %s2722_s13, 0 }
  0x8c   : > { %s2611_s10 = sand.u32 (!%p2728_p9), 1, %s2322_s28   ;;  %p2729_p13 = scmp.ne.s32.totalorder (!%p2728_p9), %s2719_s11, 0 }
  0x8d   : > { %327 = sbr.rel (%p2728_p9) target bundleno = 1278 (0x4fe), region = 52  ;;  %s1649_s22 = sshll.u32 (!%p2728_p9), %s2611_s10, 3 }
  0x8e   : > { %s330_s14 = scalar_lea.sflag (!%p2728_p9), [#allocation3], %s2611_s10  ;;  %s2615_s16 = scalar_lea.vmem (!%p2728_p9), [#allocation2], %s1649_s22 }
  0x94   : > { %2301 = dma.done.wait (%p2729_p13), %s330_s14, 128  }
  0x95   : > { %2303 = vsyncadd (%p2729_p13), %s330_s14, 4294967168  ;;  %p2730_p10 = scmp.eq.s32.totalorder %s2413_s9, 0 }
  0x97   : > { %2305 = dma.done.wait (%p2730_p10), [#allocation6], 6144   ;;  %p2731_p4 = pmov %p2730_p10 }
  0x99   : > { %2307 = vsyncadd (%p2731_p4), [#allocation6], 4294961152  ;;  %p2732_p8 = pmov %p2731_p4 }
  0x9a   : > { %p2733_p6 = pmov %p2731_p4 }
  0x9b   : > { %2309 = dma.done.wait (%p2732_p8), [#allocation9], 10240  }
  0x9c   : > { %2311 = vsyncadd (%p2733_p6), [#allocation9], 4294957056  ;;  %v2343_v0 = vmov 0   ;;  %v1909_v1 = vld [vmem:[#allocation5 + $0x4] ss:$8 sps:$4 sm:$0xff]   ;;  %v1933_v28 = vld [vmem:[%s2615_s16] sm:$0xff]  }
  0x9d   : > { %599 = vmatprep.mubr.bf16.mxu0 %v2343_v0  ;;  %v1911_v2 = vld [vmem:[#allocation5] ss:$8 sps:$4 sm:$0xff]   ;;  %567 = vmatprep.subr.bf16.mxu0 %v1909_v1  ;;  %v1912_v3 = vld [vmem:[#allocation5 + $0x14] ss:$8 sps:$4 sm:$0xff]   ;;  %v1914_v4 = vld [vmem:[#allocation5 + $0x10] ss:$8 sps:$4 sm:$0xff]  }
  0x9e   : > { %568 = vmatpush1.bf16.msra.mxu0 %v1911_v2  ;;  %v1915_v5 = vld [vmem:[#allocation5 + $0x24] ss:$8 sps:$4 sm:$0xff]   ;;  %v1917_v6 = vld [vmem:[#allocation5 + $0x20] ss:$8 sps:$4 sm:$0xff]   ;;  %v1918_v7 = vld [vmem:[#allocation5 + $0x34] ss:$8 sps:$4 sm:$0xff]  }
  0x9f   : > { %569 = vmatprep.subr.bf16.mxu0 %v1912_v3  ;;  %v1920_v8 = vld [vmem:[#allocation5 + $0x30] ss:$8 sps:$4 sm:$0xff]   ;;  %v1921_v9 = vld [vmem:[#allocation5 + $0x44] ss:$8 sps:$4 sm:$0xff]   ;;  %v1936_v11 = vld [vmem:[#allocation7] ss:$8 sps:$4 sm:$0xff]  }
  0xa0   : > { %v1934_v10 = vld [vmem:[#allocation7 + $0x4] ss:$8 sps:$4 sm:$0xff]   ;;  %v1937_v12 = vld [vmem:[#allocation7 + $0x14] ss:$8 sps:$4 sm:$0xff]   ;;  %v1923_v13 = vld [vmem:[#allocation5 + $0x40] ss:$8 sps:$4 sm:$0xff]  }
  0xa1   : > { %803 = vmatprep.subr.bf16.mxu1 %v1934_v10  ;;  %v1939_v14 = vld [vmem:[#allocation7 + $0x10] ss:$8 sps:$4 sm:$0xff]   ;;  %v1924_v15 = vld [vmem:[#allocation5 + $0x54] ss:$8 sps:$4 sm:$0xff]   ;;  %v1940_v16 = vld [vmem:[#allocation7 + $0x24] ss:$8 sps:$4 sm:$0xff]  }
  0xa2   : > { %570 = vmatpush1.bf16.msra.mxu0 %v1914_v4  ;;  %804 = vmatpush1.bf16.msra.mxu1 %v1936_v11  ;;  %v1926_v17 = vld [vmem:[#allocation5 + $0x50] ss:$8 sps:$4 sm:$0xff]   ;;  %v1942_v18 = vld [vmem:[#allocation7 + $0x20] ss:$8 sps:$4 sm:$0xff]   ;;  %v1927_v19 = vld [vmem:[#allocation5 + $0x64] ss:$8 sps:$4 sm:$0xff]  }
  0xa3   : > { %571 = vmatprep.subr.bf16.mxu0 %v1915_v5  ;;  %805 = vmatprep.subr.bf16.mxu1 %v1937_v12  ;;  %v1943_v20 = vld [vmem:[#allocation7 + $0x34] ss:$8 sps:$4 sm:$0xff]   ;;  %v1929_v21 = vld [vmem:[#allocation5 + $0x60] ss:$8 sps:$4 sm:$0xff]   ;;  %v1945_v22 = vld [vmem:[#allocation7 + $0x30] ss:$8 sps:$4 sm:$0xff]  }
  0xa4   : > { %v1930_v23 = vld [vmem:[#allocation5 + $0x74] ss:$8 sps:$4 sm:$0xff]   ;;  %v1946_v24 = vld [vmem:[#allocation7 + $0x44] ss:$8 sps:$4 sm:$0xff]   ;;  %v1932_v25 = vld [vmem:[#allocation5 + $0x70] ss:$8 sps:$4 sm:$0xff]  }
  0xa5   : > { %v1948_v26 = vld [vmem:[#allocation7 + $0x40] ss:$8 sps:$4 sm:$0xff]   ;;  %v1949_v27 = vld [vmem:[#allocation7 + $0x54] ss:$8 sps:$4 sm:$0xff]   ;;  %v1951_v29 = vld [vmem:[#allocation7 + $0x50] ss:$8 sps:$4 sm:$0xff]  }
  0xa6   : > { %572 = vmatpush1.bf16.msra.mxu0 %v1917_v6  ;;  %806 = vmatpush1.bf16.msra.mxu1 %v1939_v14  ;;  %v1952_v30 = vld [vmem:[#allocation7 + $0x64] ss:$8 sps:$4 sm:$0xff]   ;;  %v1954_v31 = vld [vmem:[#allocation7 + $0x60] ss:$8 sps:$4 sm:$0xff]   ;;  %v1955_v32 = vld [vmem:[#allocation7 + $0x74] ss:$8 sps:$4 sm:$0xff]   ;;  %v471_v6 = vlaneseq }
  0xa7   : > { %573 = vmatprep.subr.bf16.mxu0 %v1918_v7  ;;  %807 = vmatprep.subr.bf16.mxu1 %v1940_v16  ;;  %v1957_v33 = vld [vmem:[#allocation7 + $0x70] ss:$8 sps:$4 sm:$0xff]   ;;  %v1958_v34 = vld [vmem:[#allocation7 + $0x84] ss:$8 sps:$4 sm:$0xff]   ;;  %v1960_v35 = vld [vmem:[#allocation7 + $0x80] ss:$8 sps:$4 sm:$0xff]  }
  0xa8   : > { %v1961_v36 = vld [vmem:[#allocation7 + $0x94] ss:$8 sps:$4 sm:$0xff]   ;;  %v1963_v37 = vld [vmem:[#allocation7 + $0x90] ss:$8 sps:$4 sm:$0xff]   ;;  %v1964_v38 = vld [vmem:[#allocation7 + $0xa4] ss:$8 sps:$4 sm:$0xff]  }
  0xa9   : > { %v1966_v39 = vld [vmem:[#allocation7 + $0xa0] ss:$8 sps:$4 sm:$0xff]   ;;  %v1967_v40 = vld [vmem:[#allocation7 + $0xb4] ss:$8 sps:$4 sm:$0xff]   ;;  %v1969_v41 = vld [vmem:[#allocation7 + $0xb0] ss:$8 sps:$4 sm:$0xff]  }
  0xaa   : > { %574 = vmatpush1.bf16.msra.mxu0 %v1920_v8  ;;  %808 = vmatpush1.bf16.msra.mxu1 %v1942_v18  ;;  %v1970_v42 = vld [vmem:[#allocation7 + $0xc4] ss:$8 sps:$4 sm:$0xff]   ;;  %v1972_v43 = vld [vmem:[#allocation7 + $0xc0] ss:$8 sps:$4 sm:$0xff]   ;;  %v1973_v44 = vld [vmem:[#allocation7 + $0xd4] ss:$8 sps:$4 sm:$0xff]  }
  0xab   : > { %575 = vmatprep.subr.bf16.mxu0 %v1921_v9  ;;  %809 = vmatprep.subr.bf16.mxu1 %v1943_v20  ;;  %v1975_v45 = vld [vmem:[#allocation7 + $0xd0] ss:$8 sps:$4 sm:$0xff]   ;;  %v1976_v46 = vld [vmem:[#allocation7 + $0xe4] ss:$8 sps:$4 sm:$0xff]   ;;  %v1978_v47 = vld [vmem:[#allocation7 + $0xe0] ss:$8 sps:$4 sm:$0xff]  }
  0xac   : > { %v1979_v48 = vld [vmem:[#allocation7 + $0xf4] ss:$8 sps:$4 sm:$0xff]   ;;  %v1981_v49 = vld [vmem:[#allocation7 + $0xf0] ss:$8 sps:$4 sm:$0xff]   ;;  %v1982_v50 = vld [vmem:[#allocation8] ss:$8 sps:$4 sm:$0xff]  }
  0xad   : > { %v1984_v51 = vld [vmem:[#allocation8 + $0x4] ss:$8 sps:$4 sm:$0xff]   ;;  %v1987_v52 = vld [vmem:[#allocation8 + $0x14] ss:$8 sps:$4 sm:$0xff]   ;;  %v1985_v53 = vld [vmem:[#allocation8 + $0x10] ss:$8 sps:$4 sm:$0xff]  }
  0xae   : > { %576 = vmatpush1.bf16.msra.mxu0 %v1923_v13  ;;  %810 = vmatpush1.bf16.msra.mxu1 %v1945_v22  ;;  %v1990_v54 = vld [vmem:[#allocation8 + $0x24] ss:$8 sps:$4 sm:$0xff]   ;;  %v1988_v55 = vld [vmem:[#allocation8 + $0x20] ss:$8 sps:$4 sm:$0xff]   ;;  %v1993_v56 = vld [vmem:[#allocation8 + $0x34] ss:$8 sps:$4 sm:$0xff]  }
  0xaf   : > { %577 = vmatprep.subr.bf16.mxu0 %v1924_v15  ;;  %811 = vmatprep.subr.bf16.mxu1 %v1946_v24  ;;  %v1991_v57 = vld [vmem:[#allocation8 + $0x30] ss:$8 sps:$4 sm:$0xff]   ;;  %v1996_v58 = vld [vmem:[#allocation8 + $0x44] ss:$8 sps:$4 sm:$0xff]   ;;  %v1994_v59 = vld [vmem:[#allocation8 + $0x40] ss:$8 sps:$4 sm:$0xff]  }
  0xb0   : > { %v1999_v60 = vld [vmem:[#allocation8 + $0x54] ss:$8 sps:$4 sm:$0xff]   ;;  %v1997_v61 = vld [vmem:[#allocation8 + $0x50] ss:$8 sps:$4 sm:$0xff]   ;;  %v2002_v62 = vld [vmem:[#allocation8 + $0x64] ss:$8 sps:$4 sm:$0xff]  }
  0xb1   : > { %v2000_v63 = vld [vmem:[#allocation8 + $0x60] ss:$8 sps:$4 sm:$0xff]   ;;  %v2005_v0 = vld [vmem:[#allocation8 + $0x74] ss:$8 sps:$4 sm:$0xff]   ;;  %v2003_v1 = vld [vmem:[#allocation8 + $0x70] ss:$8 sps:$4 sm:$0xff]  }
  0xb2   : > { %578 = vmatpush1.bf16.msra.mxu0 %v1926_v17  ;;  %812 = vmatpush1.bf16.msra.mxu1 %v1948_v26  ;;  %v2008_v2 = vld [vmem:[#allocation8 + $0x84] ss:$8 sps:$4 sm:$0xff]   ;;  %v2006_v3 = vld [vmem:[#allocation8 + $0x80] ss:$8 sps:$4 sm:$0xff]   ;;  %v2011_v4 = vld [vmem:[#allocation8 + $0x94] ss:$8 sps:$4 sm:$0xff]  }
  0xb3   : > { %579 = vmatprep.subr.bf16.mxu0 %v1927_v19  ;;  %813 = vmatprep.subr.bf16.mxu1 %v1949_v27  ;;  %v2009_v5 = vld [vmem:[#allocation8 + $0x90] ss:$8 sps:$4 sm:$0xff]   ;;  %v472_v7 = vshrl.u32 %v471_v6, 7  ;;  %s1811_s17 = smul.u32 48, %s2611_s10  ;;  %s1513_s14 = scalar_lea.sflag [#allocation4], %s2611_s10 }
  0xb4   : > { %v403_v9 = vld [vmem:[%s2706_s2] sm:$0x3]  ;;  %s1812_s18 = smul.u32 768, %s2413_s9  ;;  %s2344_s11 = smov [#allocation11]  }
  0xb5   : > { %v2630_v8 = vsub.s32 0, %v472_v7  ;;  %v2635_v10 = vsub.s32 1, %v472_v7  ;;  %s381_s20 = scalar_lea.vmem [#allocation11], %s1811_s17  ;;  %s2260_s13 = sshll.u32 %s2344_s11, 4  ;;  %s2261_s13 = int_to_ptr.vmem [resolvable:$false] %s2260_s13 }
  0xb6   : > { %580 = vmatpush1.bf16.msra.mxu0 %v1929_v21  ;;  %814 = vmatpush1.bf16.msra.mxu1 %v1951_v29  ;;  %s1527_s12 = sshll.u32 %s381_s20, 4  ;;  %s2661_s22 = scalar_lea.hbm %s2712_s8, %s1812_s18  ;;  %s2656_s12 = int_to_ptr.vmem [resolvable:$true] %s1527_s12 }
  0xb7   : > { %581 = vmatprep.subr.bf16.mxu0 %v1930_v23  ;;  %815 = vmatprep.subr.bf16.mxu1 %v1952_v30  ;;  %v474_v11 = vrot.slane %v403_v9, %v2630_v8  ;;  %v478_v12 = vrot.slane %v403_v9, %v2635_v10  ;;  %s2256_s16 = scalar_lea.vmem %s2656_s12, 768  ;;  %s2262_s15 = scalar_lea.vmem %s2261_s13, 1536 }
  0xb8   : > { %p2257_p0 = scmp.ne.s32.totalorder %s2656_s12, %s2256_s16  ;;  %p2263_p11 = scmp.lt.s32.totalorder %s2656_s12, %s2261_s13 }
  0xb9   : > { %p2264_p1 = scmp.lt.s32.totalorder %s2262_s15, %s2256_s16 }
  0xba   : > { %582 = vmatpush1.bf16.msra.mxu0 %v1932_v25  ;;  %816 = vmatpush1.bf16.msra.mxu1 %v1954_v31  ;;  %p2258_p5 = pnand %p2257_p0, %p2562_p3 }
  0xbb   : > { %817 = vmatprep.subr.bf16.mxu1 %v1955_v32  ;;  %1039 = vmatprep.subr.bf16.mxu0 %v1984_v51  ;;  %v2026_v51 = vld [vmem:[#allocation8 + $0xe4] ss:$8 sps:$4 sm:$0xff]   ;;  %p2265_p2 = por %p2264_p1, %p2263_p11 }
  0xbc   : > { %p2259_p7 = pneg %p2258_p5 }
  0xbd   : > { %600 = vmatmul.mubr.bf16.vlgmr.msra.gmra.mrb[0].mxu0 %v1933_v28 }
  0xbe   : > { %818 = vmatpush1.bf16.msra.mxu1 %v1957_v33  ;;  %1040 = vmatpush1.bf16.msra.mxu0 %v1982_v50  ;;  %v2021_v50 = vld [vmem:[#allocation8 + $0xd0] ss:$8 sps:$4 sm:$0xff]   ;;  %p2266_p12 = pnand %p2265_p2, %p2259_p7 }
  0xbf   : > { %819 = vmatprep.subr.bf16.mxu1 %v1958_v34  ;;  %1041 = vmatprep.subr.bf16.mxu0 %v1987_v52  ;;  %v2024_v52 = vld [vmem:[#allocation8 + $0xe0] ss:$8 sps:$4 sm:$0xff]  }
  0xc2   : > { %820 = vmatpush1.bf16.msra.mxu1 %v1960_v35  ;;  %1042 = vmatpush1.bf16.msra.mxu0 %v1985_v53  ;;  %v2029_v53 = vld [vmem:[#allocation8 + $0xf4] ss:$8 sps:$4 sm:$0xff]  }
  0xc3   : > { %821 = vmatprep.subr.bf16.mxu1 %v1961_v36  ;;  %1043 = vmatprep.subr.bf16.mxu0 %v1990_v54  ;;  %v2027_v54 = vld [vmem:[#allocation8 + $0xf0] ss:$8 sps:$4 sm:$0xff]  }
  0xc6   : > { %822 = vmatpush1.bf16.msra.mxu1 %v1963_v37  ;;  %1044 = vmatpush1.bf16.msra.mxu0 %v1988_v55  ;;  %v436_v55 = vld [vmem:[%s2708_s4] sm:$0x3] }
  0xc7   : > { %823 = vmatprep.subr.bf16.mxu1 %v1964_v38  ;;  %1045 = vmatprep.subr.bf16.mxu0 %v1993_v56  ;;  %v636_v56 = vrot.slane %v436_v55, %v2630_v8 }
  0xca   : > { %824 = vmatpush1.bf16.msra.mxu1 %v1966_v39  ;;  %1046 = vmatpush1.bf16.msra.mxu0 %v1991_v57  ;;  %v640_v57 = vrot.slane %v436_v55, %v2635_v10 }
  0xcb   : > { %825 = vmatprep.subr.bf16.mxu1 %v1967_v40  ;;  %1047 = vmatprep.subr.bf16.mxu0 %v1996_v58 }
  0xce   : > { %826 = vmatpush1.bf16.msra.mxu1 %v1969_v41  ;;  %1048 = vmatpush1.bf16.msra.mxu0 %v1994_v59 }
  0xcf   : > { %827 = vmatprep.subr.bf16.mxu1 %v1970_v42  ;;  %1049 = vmatprep.subr.bf16.mxu0 %v1999_v60 }
  0xd2   : > { %828 = vmatpush1.bf16.msra.mxu1 %v1972_v43  ;;  %1050 = vmatpush1.bf16.msra.mxu0 %v1997_v61  ;;  %v2014_v43 = vld [vmem:[#allocation8 + $0xa4] ss:$8 sps:$4 sm:$0xff]  }
  0xd3   : > { %829 = vmatprep.subr.bf16.mxu1 %v1973_v44  ;;  %1051 = vmatprep.subr.bf16.mxu0 %v2002_v62  ;;  %v2012_v44 = vld [vmem:[#allocation8 + $0xa0] ss:$8 sps:$4 sm:$0xff]  }
  0xd6   : > { %830 = vmatpush1.bf16.msra.mxu1 %v1975_v45  ;;  %1052 = vmatpush1.bf16.msra.mxu0 %v2000_v63  ;;  %v2017_v45 = vld [vmem:[#allocation8 + $0xb4] ss:$8 sps:$4 sm:$0xff]  }
  0xd7   : > { %831 = vmatprep.subr.bf16.mxu1 %v1976_v46  ;;  %1053 = vmatprep.subr.bf16.mxu0 %v2005_v0  ;;  %v2015_v46 = vld [vmem:[#allocation8 + $0xb0] ss:$8 sps:$4 sm:$0xff]  }
  0xda   : > { %832 = vmatpush1.bf16.msra.mxu1 %v1978_v47  ;;  %1054 = vmatpush1.bf16.msra.mxu0 %v2003_v1  ;;  %v2020_v47 = vld [vmem:[#allocation8 + $0xc4] ss:$8 sps:$4 sm:$0xff]  }
  0xdb   : > { %833 = vmatprep.subr.bf16.mxu1 %v1979_v48  ;;  %1055 = vmatprep.subr.bf16.mxu0 %v2008_v2  ;;  %v2018_v48 = vld [vmem:[#allocation8 + $0xc0] ss:$8 sps:$4 sm:$0xff]  }
  0xde   : > { %834 = vmatpush1.bf16.msra.mxu1 %v1981_v49  ;;  %1056 = vmatpush1.bf16.msra.mxu0 %v2006_v3  ;;  %v2023_v49 = vld [vmem:[#allocation8 + $0xd4] ss:$8 sps:$4 sm:$0xff]  }
  0xdf   : > { %1057 = vmatprep.subr.bf16.mxu0 %v2011_v4 }
  0xe2   : > { %1058 = vmatpush1.bf16.msra.mxu0 %v2009_v5 }
  0xe3   : > { %1059 = vmatprep.subr.bf16.mxu0 %v2014_v43  ;;  %v2045_v43 = vld [vmem:[#allocation10 + $0x78] ss:$12 sps:$4 sm:$0xff]  }
  0xe6   : > { %1060 = vmatpush1.bf16.msra.mxu0 %v2012_v44  ;;  %v2050_v44 = vld [vmem:[#allocation10 + $0x94] ss:$12 sps:$4 sm:$0xff]  }
  0xe7   : > { %1061 = vmatprep.subr.bf16.mxu0 %v2017_v45  ;;  %v2048_v45 = vld [vmem:[#allocation10 + $0x90] ss:$12 sps:$4 sm:$0xff]  }
  0xea   : > { %1062 = vmatpush1.bf16.msra.mxu0 %v2015_v46  ;;  %v2053_v46 = vld [vmem:[#allocation10 + $0xac] ss:$12 sps:$4 sm:$0xff]  }
  0xeb   : > { %1063 = vmatprep.subr.bf16.mxu0 %v2020_v47  ;;  %v2051_v47 = vld [vmem:[#allocation10 + $0xa8] ss:$12 sps:$4 sm:$0xff]  }
  0xee   : > { %1064 = vmatpush1.bf16.msra.mxu0 %v2018_v48  ;;  %v2056_v48 = vld [vmem:[#allocation10 + $0xc4] ss:$12 sps:$4 sm:$0xff]  }
  0xef   : > { %1065 = vmatprep.subr.bf16.mxu0 %v2023_v49  ;;  %v2054_v49 = vld [vmem:[#allocation10 + $0xc0] ss:$12 sps:$4 sm:$0xff]  }
  0xf2   : > { %1066 = vmatpush1.bf16.msra.mxu0 %v2021_v50  ;;  %v2061_v50 = vld [vmem:[#allocation10 + $0xdc] ss:$12 sps:$4 sm:$0xff]  }
  0xf3   : > { %1067 = vmatprep.subr.bf16.mxu0 %v2026_v51  ;;  %v2059_v51 = vld [vmem:[#allocation10 + $0xd8] ss:$12 sps:$4 sm:$0xff]  }
  0xf6   : > { %1068 = vmatpush1.bf16.msra.mxu0 %v2024_v52  ;;  %v2066_v52 = vld [vmem:[#allocation10 + $0xf4] ss:$12 sps:$4 sm:$0xff]  }
  0xf7   : > { %1069 = vmatprep.subr.bf16.mxu0 %v2029_v53  ;;  %v2064_v53 = vld [vmem:[#allocation10 + $0xf0] ss:$12 sps:$4 sm:$0xff]  }
  0xfa   : > { %1070 = vmatpush1.bf16.msra.mxu0 %v2027_v54  ;;  %v469_v54 = vld [vmem:[%s2710_s6] sm:$0x3] }
  0xfb   : > { %v872_v55 = vrot.slane %v469_v54, %v2630_v8 }
 0x190   : > { %v601_v13 = vpop.f32.mrb[0].mxu0 }
 0x191   : > { %v602_v14 = vadd.f32 %v601_v13, %v474_v11  ;;  %v603_v15 = vpop.f32.mrb[1].mxu0 }
 0x192   : > { %v604_v16 = vadd.f32 %v603_v15, %v478_v12  ;;  %v605_v17 = vpop.f32.mrb[2].mxu0 }
 0x193   : > { %v614_v18 = vmul.f32 0.70710677, %v602_v14  ;;  %v606_v19 = vadd.f32 %v605_v17, %v474_v11  ;;  %v607_v20 = vpop.f32.mrb[3].mxu0  ;;  %v610_v31 = vmul.f32 0.5, %v602_v14 }
 0x194   : > { %v615_v21 = vmul.f32 0.70710677, %v604_v16  ;;  %v608_v22 = vadd.f32 %v607_v20, %v478_v12  ;;  %v611_v34 = vmul.f32 0.5, %v604_v16 }
 0x195   : > { %2094 = verf.f32 %v614_v18  ;;  %v616_v23 = vmul.f32 0.70710677, %v606_v19  ;;  %v612_v32 = vmul.f32 0.5, %v606_v19 }
 0x196   : > { %2096 = verf.f32 %v615_v21  ;;  %v617_v24 = vmul.f32 0.70710677, %v608_v22  ;;  %v613_v35 = vmul.f32 0.5, %v608_v22 }
 0x197   : > { %2098 = verf.f32 %v616_v23 }
 0x198   : > { %2100 = verf.f32 %v617_v24 }
 0x19f   : > { %v2095_v25 = vpop.eup %2094 }
 0x1a0   : > { %v2097_v26 = vpop.eup %2096  ;;  %v622_v27 = vadd.f32 1.0, %v2095_v25 }
 0x1a1   : > { %v2099_v28 = vpop.eup %2098  ;;  %v623_v29 = vadd.f32 1.0, %v2097_v26  ;;  %v2030_v26 = vld [vmem:[#allocation10] ss:$12 sps:$4 sm:$0xff]  }
 0x1a2   : > { %v2101_v30 = vpop.eup %2100  ;;  %v624_v33 = vadd.f32 1.0, %v2099_v28  ;;  %v626_v37 = vmul.f32 %v622_v27, %v610_v31  ;;  %v2032_v27 = vld [vmem:[#allocation10 + $0x4] ss:$12 sps:$4 sm:$0xff]   ;;  %v2035_v28 = vld [vmem:[#allocation10 + $0x1c] ss:$12 sps:$4 sm:$0xff]  }
 0x1a3   : > { %v625_v36 = vadd.f32 1.0, %v2101_v30  ;;  %v627_v39 = vmul.f32 %v623_v29, %v611_v34  ;;  %1422 = vmatprep.subr.bf16.mxu1 %v2032_v27  ;;  %v2033_v29 = vld [vmem:[#allocation10 + $0x18] ss:$12 sps:$4 sm:$0xff]   ;;  %v2038_v30 = vld [vmem:[#allocation10 + $0x34] ss:$12 sps:$4 sm:$0xff]  }
 0x1a4   : > { %v628_v38 = vmul.f32 %v624_v33, %v612_v32  ;;  %v2057_v31 = vld [vmem:[#allocation10 + $0xc8] ss:$12 sps:$4 sm:$0xff]   ;;  %v2036_v33 = vld [vmem:[#allocation10 + $0x30] ss:$12 sps:$4 sm:$0xff]   ;;  %v2062_v34 = vld [vmem:[#allocation10 + $0xe0] ss:$12 sps:$4 sm:$0xff]  }
 0x1a5   : > { %v629_v40 = vmul.f32 %v625_v36, %v613_v35  ;;  %v2058_v32 = vld [vmem:[#allocation10 + $0x8] ss:$12 sps:$4 sm:$0xff]   ;;  %v2041_v35 = vld [vmem:[#allocation10 + $0x4c] ss:$12 sps:$4 sm:$0xff]   ;;  %1789 = vmatprep.subr.bf16.mxu0 %v2057_v31 }
 0x1a6   : > { %v630_v41 = vpack.c.bf16 %v628_v38, %v626_v37  ;;  %v2063_v36 = vld [vmem:[#allocation10 + $0x20] ss:$12 sps:$4 sm:$0xff]   ;;  %v2067_v37 = vld [vmem:[#allocation10 + $0xf8] ss:$12 sps:$4 sm:$0xff]   ;;  %v2039_v38 = vld [vmem:[#allocation10 + $0x48] ss:$12 sps:$4 sm:$0xff]  }
 0x1a7   : > { %v631_v42 = vpack.c.bf16 %v629_v40, %v627_v39  ;;  %v2044_v39 = vld [vmem:[#allocation10 + $0x64] ss:$12 sps:$4 sm:$0xff]  }
 0x1a8   : > { %v2068_v40 = vld [vmem:[#allocation10 + $0x38] ss:$12 sps:$4 sm:$0xff]  }
 0x1a9   : > { %835 = vmatprep.mubr.bf16.mxu1 %v631_v42  ;;  %v2047_v42 = vld [vmem:[#allocation10 + $0x7c] ss:$12 sps:$4 sm:$0xff]  }
 0x1aa   : > { %836 = vmatmul.mubr.bf16.vlgmr.msra.gmra.mrb[0].mxu1 %v630_v41  ;;  %v2042_v41 = vld [vmem:[#allocation10 + $0x60] ss:$12 sps:$4 sm:$0xff]  }
 0x1ab   : > { %1423 = vmatpush1.bf16.msra.mxu1 %v2030_v26  ;;  %v2093_v26 = vld [vmem:[#allocation10 + $0xb0] ss:$12 sps:$4 sm:$0xff]  }
 0x1ac   : > { %1424 = vmatprep.subr.bf16.mxu1 %v2035_v28 }
 0x1af   : > { %1425 = vmatpush1.bf16.msra.mxu1 %v2033_v29 }
 0x1b0   : > { %1426 = vmatprep.subr.bf16.mxu1 %v2038_v30 }
 0x1b3   : > { %1427 = vmatpush1.bf16.msra.mxu1 %v2036_v33 }
 0x1b4   : > { %1428 = vmatprep.subr.bf16.mxu1 %v2041_v35 }
 0x1b7   : > { %1429 = vmatpush1.bf16.msra.mxu1 %v2039_v38 }
 0x1b8   : > { %1430 = vmatprep.subr.bf16.mxu1 %v2044_v39 }
 0x1bb   : > { %1431 = vmatpush1.bf16.msra.mxu1 %v2042_v41 }
 0x1bc   : > { %1432 = vmatprep.subr.bf16.mxu1 %v2047_v42 }
 0x1bf   : > { %1433 = vmatpush1.bf16.msra.mxu1 %v2045_v43 }
 0x1c0   : > { %1434 = vmatprep.subr.bf16.mxu1 %v2050_v44 }
 0x1c3   : > { %1435 = vmatpush1.bf16.msra.mxu1 %v2048_v45 }
 0x1c4   : > { %1436 = vmatprep.subr.bf16.mxu1 %v2053_v46 }
 0x1c7   : > { %1437 = vmatpush1.bf16.msra.mxu1 %v2051_v47 }
 0x1c8   : > { %1438 = vmatprep.subr.bf16.mxu1 %v2056_v48 }
 0x1cb   : > { %1439 = vmatpush1.bf16.msra.mxu1 %v2054_v49 }
 0x1cc   : > { %1440 = vmatprep.subr.bf16.mxu1 %v2061_v50 }
 0x1cf   : > { %1441 = vmatpush1.bf16.msra.mxu1 %v2059_v51 }
 0x1d0   : > { %1442 = vmatprep.subr.bf16.mxu1 %v2066_v52 }
 0x1d3   : > { %1443 = vmatpush1.bf16.msra.mxu1 %v2064_v53 }
 0x27d   : > { %v837_v58 = vpop.f32.mrb[0].mxu1 }
 0x27e   : > { %v838_v59 = vadd.f32 %v837_v58, %v636_v56  ;;  %v839_v60 = vpop.f32.mrb[1].mxu1 }
 0x27f   : > { %v840_v61 = vadd.f32 %v839_v60, %v640_v57  ;;  %v841_v62 = vpop.f32.mrb[2].mxu1 }
 0x280   : > { %v850_v63 = vmul.f32 0.70710677, %v838_v59  ;;  %v842_v0 = vadd.f32 %v841_v62, %v636_v56  ;;  %v843_v1 = vpop.f32.mrb[3].mxu1  ;;  %v846_v14 = vmul.f32 0.5, %v838_v59  ;;  %v876_v56 = vrot.slane %v469_v54, %v2635_v10  ;;  %v2071_v10 = vld [vmem:[#allocation10 + $0x10c] ss:$12 sps:$4 sm:$0xff]  }
 0x281   : > { %v851_v2 = vmul.f32 0.70710677, %v840_v61  ;;  %v844_v3 = vadd.f32 %v843_v1, %v640_v57  ;;  %v847_v17 = vmul.f32 0.5, %v840_v61  ;;  %1444 = vmatprep.subr.bf16.mxu1 %v2071_v10 }
 0x282   : > { %2102 = verf.f32 %v850_v63  ;;  %v852_v4 = vmul.f32 0.70710677, %v842_v0  ;;  %v848_v15 = vmul.f32 0.5, %v842_v0 }
 0x283   : > { %2104 = verf.f32 %v851_v2  ;;  %v853_v5 = vmul.f32 0.70710677, %v844_v3  ;;  %v849_v18 = vmul.f32 0.5, %v844_v3 }
 0x284   : > { %2106 = verf.f32 %v852_v4 }
 0x285   : > { %2108 = verf.f32 %v853_v5 }
 0x28c   : > { %v2103_v6 = vpop.eup %2102 }
 0x28d   : > { %v2105_v7 = vpop.eup %2104  ;;  %v858_v9 = vadd.f32 1.0, %v2103_v6  ;;  %v2072_v6 = vld [vmem:[#allocation10 + $0x110] ss:$12 sps:$4 sm:$0xff]  }
 0x28e   : > { %v2107_v11 = vpop.eup %2106  ;;  %v859_v12 = vadd.f32 1.0, %v2105_v7  ;;  %v2069_v7 = vld [vmem:[#allocation10 + $0x108] ss:$12 sps:$4 sm:$0xff]  }
 0x28f   : > { %v2109_v13 = vpop.eup %2108  ;;  %v860_v16 = vadd.f32 1.0, %v2107_v11  ;;  %v862_v20 = vmul.f32 %v858_v9, %v846_v14  ;;  %v2073_v9 = vld [vmem:[#allocation10 + $0x50] ss:$12 sps:$4 sm:$0xff]   ;;  %1445 = vmatpush1.bf16.msra.mxu1 %v2069_v7  ;;  %v2078_v14 = vld [vmem:[#allocation10 + $0x68] ss:$12 sps:$4 sm:$0xff]  }
 0x290   : > { %v861_v19 = vadd.f32 1.0, %v2109_v13  ;;  %v863_v22 = vmul.f32 %v859_v12, %v847_v17  ;;  %v2076_v11 = vld [vmem:[#allocation10 + $0x124] ss:$12 sps:$4 sm:$0xff]   ;;  %v2077_v12 = vld [vmem:[#allocation10 + $0x128] ss:$12 sps:$4 sm:$0xff]  }
 0x291   : > { %v864_v21 = vmul.f32 %v860_v16, %v848_v15  ;;  %v2074_v13 = vld [vmem:[#allocation10 + $0x120] ss:$12 sps:$4 sm:$0xff]   ;;  %1446 = vmatprep.subr.bf16.mxu1 %v2076_v11  ;;  %v2081_v15 = vld [vmem:[#allocation10 + $0x13c] ss:$12 sps:$4 sm:$0xff]   ;;  %v2079_v17 = vld [vmem:[#allocation10 + $0x138] ss:$12 sps:$4 sm:$0xff]  }
 0x292   : > { %v865_v23 = vmul.f32 %v861_v19, %v849_v18  ;;  %v2082_v16 = vld [vmem:[#allocation10 + $0x140] ss:$12 sps:$4 sm:$0xff]  }
 0x293   : > { %v866_v24 = vpack.c.bf16 %v864_v21, %v862_v20  ;;  %1447 = vmatpush1.bf16.msra.mxu1 %v2074_v13  ;;  %v2083_v18 = vld [vmem:[#allocation10 + $0x80] ss:$12 sps:$4 sm:$0xff]   ;;  %v2087_v20 = vld [vmem:[#allocation10 + $0x158] ss:$12 sps:$4 sm:$0xff]   ;;  %v2084_v21 = vld [vmem:[#allocation10 + $0x150] ss:$12 sps:$4 sm:$0xff]  }
 0x294   : > { %v867_v25 = vpack.c.bf16 %v865_v23, %v863_v22  ;;  %1448 = vmatprep.subr.bf16.mxu1 %v2081_v15  ;;  %v2086_v19 = vld [vmem:[#allocation10 + $0x154] ss:$12 sps:$4 sm:$0xff]   ;;  %v2088_v22 = vld [vmem:[#allocation10 + $0x98] ss:$12 sps:$4 sm:$0xff]  }
 0x295   : > { %v2091_v23 = vld [vmem:[#allocation10 + $0x16c] ss:$12 sps:$4 sm:$0xff]  }
 0x296   : > { %1071 = vmatprep.mubr.bf16.mxu0 %v867_v25  ;;  %v2089_v25 = vld [vmem:[#allocation10 + $0x168] ss:$12 sps:$4 sm:$0xff]  }
 0x297   : > { %1072 = vmatmul.mubr.bf16.vlgmr.msra.gmra.mrb[4].mxu0 %v866_v24  ;;  %1449 = vmatpush1.bf16.msra.mxu1 %v2079_v17  ;;  %v2092_v24 = vld [vmem:[#allocation10 + $0x170] ss:$12 sps:$4 sm:$0xff]  }
 0x298   : > { %1790 = vmatpush3.bf16.msra.mxu0 %v2058_v32  ;;  %1450 = vmatprep.subr.bf16.mxu1 %v2086_v19 }
 0x299   : > { %1791 = vmatprep.subr.bf16.mxu0 %v2062_v34 }
 0x29b   : > { %1451 = vmatpush1.bf16.msra.mxu1 %v2084_v21 }
 0x29c   : > { %1792 = vmatpush3.bf16.msra.mxu0 %v2063_v36  ;;  %1452 = vmatprep.subr.bf16.mxu1 %v2091_v23 }
 0x29d   : > { %1793 = vmatprep.subr.bf16.mxu0 %v2067_v37 }
 0x29f   : > { %1453 = vmatpush1.bf16.msra.mxu1 %v2089_v25 }
 0x2a0   : > { %1794 = vmatpush3.bf16.msra.mxu0 %v2068_v40 }
 0x2a1   : > { %1795 = vmatprep.subr.bf16.mxu0 %v2072_v6 }
 0x2a4   : > { %1796 = vmatpush3.bf16.msra.mxu0 %v2073_v9 }
 0x2a5   : > { %1797 = vmatprep.subr.bf16.mxu0 %v2077_v12 }
 0x2a8   : > { %1798 = vmatpush3.bf16.msra.mxu0 %v2078_v14 }
 0x2a9   : > { %1799 = vmatprep.subr.bf16.mxu0 %v2082_v16 }
 0x2ac   : > { %1800 = vmatpush3.bf16.msra.mxu0 %v2083_v18 }
 0x2ad   : > { %1801 = vmatprep.subr.bf16.mxu0 %v2087_v20 }
 0x2b0   : > { %1802 = vmatpush3.bf16.msra.mxu0 %v2088_v22 }
 0x2b1   : > { %1803 = vmatprep.subr.bf16.mxu0 %v2092_v24 }
 0x2b4   : > { %1804 = vmatpush3.bf16.msra.mxu0 %v2093_v26 }
 0x36a   : > { %v1073_v57 = vpop.f32.mrb[4].mxu0 }
 0x36b   : > { %v2649_v58 = vadd.f32 %v1073_v57, %v872_v55  ;;  %v1075_v59 = vpop.f32.mrb[5].mxu0 }
 0x36c   : > { %v1076_v60 = vadd.f32 %v1075_v59, %v876_v56  ;;  %v1077_v61 = vpop.f32.mrb[6].mxu0 }
 0x36d   : > { %v1078_v62 = vadd.f32 %v1077_v61, %v872_v55  ;;  %v1079_v63 = vpop.f32.mrb[7].mxu0  ;;  %v1082_v0 = vmul.f32 %v2649_v58, %v2649_v58 }
 0x36e   : > { %v1080_v1 = vadd.f32 %v1079_v63, %v876_v56  ;;  %v1083_v2 = vmul.f32 %v1076_v60, %v1076_v60 }
 0x36f   : > { %v1084_v3 = vmul.f32 %v1078_v62, %v1078_v62 }
 0x370   : > { %v1085_v4 = vmul.f32 %v1080_v1, %v1080_v1  ;;  %v1086_v5 = vadd.f32 %v1083_v2, %v1082_v0 }
 0x372   : > { %1087 = vadd.xlane.f32.xlu0 %v1086_v5  ;;  %v1089_v8 = vadd.f32 %v1085_v4, %v1084_v3 }
 0x376   : > { %1090 = vadd.xlane.f32.xlu0 %v1089_v8 }
 0x3ff   : > { %v1088_v27 = vpop.xlane.xlu0 %1087 }
 0x400   : > { %v1092_v28 = vmax.f32 %v1088_v27, 1e-24 }
 0x402   : > { %2110 = vrsqrt.f32 %v1092_v28 }
 0x403   : > { %v1091_v29 = vpop.xlane.xlu0 %1090 }
 0x404   : > { %v1093_v30 = vmax.f32 %v1091_v29, 1e-24 }
 0x406   : > { %2112 = vrsqrt.f32 %v1093_v30 }
 0x40c   : > { %v2111_v31 = vpop.eup %2110 }
 0x40d   : > { %v1097_v33 = vmul.f32 %v2111_v31, %v1076_v60  ;;  %v1096_v35 = vmul.f32 %v2111_v31, %v2649_v58 }
 0x410   : > { %v2113_v32 = vpop.eup %2112 }
 0x411   : > { %v1099_v34 = vmul.f32 %v2113_v32, %v1080_v1  ;;  %v1098_v36 = vmul.f32 %v2113_v32, %v1078_v62 }
 0x413   : > { %v1101_v37 = vpack.c.bf16 %v1099_v34, %v1097_v33  ;;  %v1100_v38 = vpack.c.bf16 %v1098_v36, %v1096_v35 }
 0x415   : > { %1454 = vmatprep.mubr.bf16.mxu1 %v1101_v37  ;;  %1497 = vmatprep.mubr.bf16.mxu0 %v1101_v37 }
 0x416   : > { %1455 = vmatmul.mubr.bf16.vlgmr.msra.gmra.mrb[4].mxu1 %v1100_v38  ;;  %1498 = vmatmul.mubr.bf16.vlgmr.msra.gmra.mrb[8].mxu0 %v1100_v38 }
 0x4e9   : > { %v1456_v39 = vpop.f32.mrb[4].mxu1  ;;  %v1805_v40 = vpop.f32.mrb[8].mxu0 }
 0x4ea   : > { %1506 = vst [vmem:[%s381_s20] sm:$0xff] %v1456_v39  ;;  %v1458_v41 = vpop.f32.mrb[5].mxu1  ;;  %v1806_v42 = vpop.f32.mrb[9].mxu0 }
 0x4eb   : > { %1507 = vst [vmem:[%s381_s20 + $0x8] sm:$0xff] %v1458_v41  ;;  %v1807_v43 = vadd.f32 %v1806_v42, %v1805_v40  ;;  %v1460_v44 = vpop.f32.mrb[6].mxu1  ;;  %v1808_v45 = vpop.f32.mrb[10].mxu0 }
 0x4ec   : > { %1509 = vst [vmem:[%s381_s20 + $0x18] sm:$0xff] %v1460_v44  ;;  %v1462_v46 = vpop.f32.mrb[7].mxu1  ;;  %v1809_v47 = vpop.f32.mrb[11].mxu0 }
 0x4ed   : > { %1508 = vst [vmem:[%s381_s20 + $0x10] sm:$0xff] %v1807_v43  ;;  %1510 = vst [vmem:[%s381_s20 + $0x20] sm:$0xff] %v1462_v46  ;;  %v1810_v48 = vadd.f32 %v1809_v47, %v1808_v45 }
 0x4ef   : > { %1511 = vst [vmem:[%s381_s20 + $0x28] sm:$0xff] %v1810_v48 }
 0x4f0   : > { %2269 = shalt.err (!%p2266_p12)
}
 0x4f1   : > { %s2270_s19 = scalar_lea.hbm %s2661_s22, 768  ;;  %s2274_s17 = scalar_lea.hbm %s2712_s8, 2304 }
 0x4f2   : > { %p2271_p9 = scmp.ne.s32.totalorder %s2661_s22, %s2270_s19  ;;  %p2275_p4 = scmp.lt.u32.totalorder %s2661_s22, %s2712_s8 }
 0x4f3   : > { %p2276_p8 = scmp.lt.u32.totalorder %s2274_s17, %s2270_s19  ;;  %p2278_p0 = scmp.lt.u32.totalorder %s2270_s19, %s2661_s22 }
 0x4f4   : > { %p2272_p13 = pnand %p2271_p9, %p2562_p3 }
 0x4f5   : > { %p2277_p6 = por %p2276_p8, %p2275_p4 }
 0x4f6   : > { %p2273_p10 = pneg %p2272_p13 }
 0x4f7   : > { %p2279_p5 = por %p2278_p0, %p2277_p6 }
 0x4f9   : > { %p2280_p7 = pnand %p2279_p5, %p2273_p10 }
 0x4fb   : > { %2283 = shalt.err (!%p2280_p7)
}
 0x4fc   : > { %s2345_s9 = smov 384   ;;  %s2346_s23 = smov 24  }
 0x4fd   : > { %1831 = dma.vmem_to_hbm [thread:$0]  (%p2562_p3), %s2656_s12, 768, %s2661_s22, %s1513_s14, %s2345_s9, %s2345_s9, %s2346_s23  }
 0x4fe PF: > { %s2734_s16 = sld [smem:[#allocation16_spill]]  ;;  %s2735_s11 = sld [smem:[#allocation17_spill]] }
 0x4ff   : > { %p1863_p11 = scmp.ge.s32.totalorder %s2330_s30, 2 }
 0x504   : > { %s1542_s13 = sand.u32 1, %s2734_s16   ;;  %p2736_p1 = scmp.ne.s32.totalorder %s2735_s11, 0 }
 0x505   : > { %s1543_s15 = scalar_lea.sflag [#allocation4], %s1542_s13 }
 0x506   : > { %p1851_p2 = pnand %p1863_p11, %p2736_p1 }
 0x508   : > { %2313 = dma.done.wait (!%p1851_p2), %s1543_s15, 768  }
 0x509   : > { %2315 = vsyncadd (!%p1851_p2), %s1543_s15, 4294966528  ;;  %s2737_s19 = smov %s2549_s27  ;;  %p23_p12 = scmp.ge.s32.totalorder %s2549_s27, 5  }
 0x50a   : > { %s2738_s27 = smov %s2322_s28  ;;  %s2739_s28 = smov %s2326_s29 }
 0x50b   : > { %s2740_s29 = smov %s2558_s24  ;;  %s2741_s30 = smov %s2737_s19 }
 0x50c   :  { %25 = sbr.rel (!%p23_p12) target bundleno = 7 (0x7), region = 113 }
 0x513   :  { %1548 = vsyncpa [#allocation3], 1 }
 0x514   :  { %1550 = vsyncpa [#allocation3 + $0x1], 1 }
 0x515   :  { %1551 = vsyncpa [#allocation6], 1 }
 0x516   :  { %1552 = vsyncpa [#allocation9], 1 }
 0x517   :  { %1553 = vsyncpa [#allocation4], 1 }
 0x518   :  { %1555 = vsyncpa [#allocation4 + $0x1], 1 }

</bundles_post_ra>
